<compile_context>
chip_gen: v5e
topology: v5e:2x2
jax: 0.10.0
libtpu: 0.0.40
codegen_flags: <defaults>
</compile_context>

<pallas_src>
import functools

import jax
import jax.numpy as jnp
from jax.experimental import pallas as pl
from jax.experimental.pallas import tpu as pltpu


def _round_up(n, m):
    return ((n + m - 1) // m) * m


def _conv1d_kernel(x_ref, w_ref, b_ref, o_ref, *, K, dilation, stride, tile_t):
    # x_ref: (1, 1, C_in_pad, IN_TILE)   input window for this time tile (incl. halo)
    # w_ref: (C_out_pad, K * C_in_pad)   fused, pre-transposed weights
    # b_ref: (C_out_pad, 1)
    # o_ref: (1, C_out_pad, TILE_T)
    if stride == 1:
        x = x_ref[0, 0]                                            # (C_in_pad, IN_TILE)
        taps = [x[:, k * dilation: k * dilation + tile_t] for k in range(K)]
    else:
        # Strided reads straight from the VMEM ref: compute only every stride-th column.
        taps = [x_ref[0, 0, :, pl.ds(k * dilation, tile_t, stride)] for k in range(K)]

    # im2col slab (K*C_in_pad, TILE_T): one deep MXU matmul instead of K shallow ones.
    slab = taps[0] if K == 1 else jnp.concatenate(taps, axis=0)
    acc = jnp.dot(w_ref[...], slab, preferred_element_type=jnp.float32)
    o_ref[0] = (acc + b_ref[...]).astype(o_ref.dtype)


def noncausal_conv1d(x, w, b=None, *, stride=1, padding=-1, dilation=1, groups=1,
                     tile_t=512, compute_dtype=None):
    """Matches NonCausalConv1d.forward: x (B, C_in, T) -> (B, C_out, T_out)."""
    assert groups == 1  # TODO(synk): grouped conv (groups > 1) not implemented
    B, C_in, T = x.shape
    C_out, _, K = w.shape
    if padding < 0:
        padding = (K - 1) // 2 * dilation
    if b is None:
        b = jnp.zeros((C_out,), x.dtype)

    # PyTorch Conv1d output length.
    T_out = (T + 2 * padding - dilation * (K - 1) - 1) // stride + 1

    # Tiling: time tile is a multiple of 128 (lane-dense stores); channels padded to 8.
    tile_t = max(128, min(_round_up(tile_t, 128), _round_up(T_out, 128)))
    n_tiles = (T_out + tile_t - 1) // tile_t
    t_out_pad = n_tiles * tile_t
    c_in_pad = _round_up(C_in, 8)
    c_out_pad = _round_up(C_out, 8)

    in_tile = (tile_t - 1) * stride + dilation * (K - 1) + 1   # per-tile window incl. halo
    l_req = (n_tiles - 1) * tile_t * stride + in_tile          # padded input length needed
    pad_right = max(0, l_req - padding - T)

    # Wrapper glue: pad once and build overlapping frames so every block is plain Blocked.
    # TODO(synk): the extra HBM pass for padded/framed input could be removed with manual
    # in-kernel DMA + halo zero-fill; kept as glue for simplicity/robustness.
    x_p = jnp.pad(x, ((0, 0), (0, c_in_pad - C_in), (padding, pad_right)))
    frames = jnp.stack(
        [x_p[:, :, ti * tile_t * stride: ti * tile_t * stride + in_tile]
         for ti in range(n_tiles)], axis=1)                    # (B, n_tiles, C_in_pad, IN_TILE)

    # Fused weight layout: w2[o, k*C_in_pad + c] = w[o, c, k]; rows padded to C_out_pad.
    w_p = jnp.pad(w, ((0, c_out_pad - C_out), (0, c_in_pad - C_in), (0, 0)))
    w2 = jnp.transpose(w_p, (0, 2, 1)).reshape(c_out_pad, K * c_in_pad)
    b2 = jnp.pad(b, (0, c_out_pad - C_out)).reshape(c_out_pad, 1).astype(jnp.float32)

    if compute_dtype is not None:   # e.g. jnp.bfloat16 on v5e/v6e/v7x; accumulation stays f32
        frames = frames.astype(compute_dtype)
        w2 = w2.astype(compute_dtype)

    out_pad = pl.pallas_call(
        functools.partial(_conv1d_kernel, K=K, dilation=dilation,
                          stride=stride, tile_t=tile_t),
        out_shape=jax.ShapeDtypeStruct((B, c_out_pad, t_out_pad), x.dtype),
        grid=(B, n_tiles),
        in_specs=[
            pl.BlockSpec((1, 1, c_in_pad, in_tile), lambda bi, ti: (bi, ti, 0, 0)),
            pl.BlockSpec((c_out_pad, K * c_in_pad), lambda bi, ti: (0, 0)),
            pl.BlockSpec((c_out_pad, 1), lambda bi, ti: (0, 0)),
        ],
        out_specs=pl.BlockSpec((1, c_out_pad, tile_t), lambda bi, ti: (bi, 0, ti)),
        compiler_params=pltpu.CompilerParams(
            dimension_semantics=("parallel", "parallel"),
            vmem_limit_bytes=48 * 1024 * 1024),   # stays inside v7x's 64 MiB physical VMEM
    )(frames, w2, b2)

    # Slice off channel / time alignment padding (wrapper glue).
    return out_pad[:, :C_out, :T_out]


if __name__ == "__main__":

    def run_case(B, C_in, C_out, K, T, stride, dilation, tile_t, key):
        kx, kw, kb = jax.random.split(key, 3)
        x = jax.random.normal(kx, (B, C_in, T), dtype=jnp.float32)
        # Deterministic init mimicking PyTorch Conv1d default (uniform +-1/sqrt(fan_in)).
        fan_in = C_in * K
        bound = 1.0 / (fan_in ** 0.5)
        w = jax.random.uniform(kw, (C_out, C_in, K), jnp.float32, -bound, bound)
        b = jax.random.uniform(kb, (C_out,), jnp.float32, -bound, bound)

        out = noncausal_conv1d(x, w, b, stride=stride, padding=-1,
                               dilation=dilation, groups=1, tile_t=tile_t)
        out = jax.block_until_ready(out)

        # Reference: XLA conv with the same semantics as nn.Conv1d.
        pad = (K - 1) // 2 * dilation
        ref = jax.lax.conv_general_dilated(
            x, w, window_strides=(stride,), padding=[(pad, pad)],
            rhs_dilation=(dilation,),
            dimension_numbers=("NCH", "OIH", "NCH")) + b.reshape(1, C_out, 1)

        assert out.shape == ref.shape, (out.shape, ref.shape)
        err = float(jnp.max(jnp.abs(out - ref)))
        assert jnp.allclose(out, ref, atol=1e-4, rtol=1e-4), err

    key = jax.random.PRNGKey(0)
    k1, k2 = jax.random.split(key)
    # Small shapes consistent with the module's (B, C, T) contract.
    run_case(B=2, C_in=4, C_out=6, K=3, T=16, stride=1, dilation=1, tile_t=512, key=k1)
    # Multi-tile path with dilation: forces n_tiles > 1 and a dilated halo.
    run_case(B=2, C_in=4, C_out=6, K=5, T=200, stride=1, dilation=2, tile_t=128, key=k2)
    print("KERNEL_OK")
</pallas_src>

<mosaic_0001>
module attributes {stable_mosaic.version = 11 : i64} {
  func.func @_conv1d_kernel(%arg0: i32, %arg1: i32, %arg2: memref<1x1x8x130xf32, #tpu.memory_space<vmem>>, %arg3: memref<8x24xf32, #tpu.memory_space<vmem>>, %arg4: memref<8x1xf32, #tpu.memory_space<vmem>>, %arg5: memref<1x8x128xf32, #tpu.memory_space<vmem>>) attributes {dimension_semantics = [#tpu.dimension_semantics<parallel>, #tpu.dimension_semantics<parallel>], iteration_bounds = array<i64: 2, 1>, scalar_prefetch = 0 : i64, scratch_operands = 0 : i64, tpu.core_type = #tpu.core_type<tc>, window_params = [{transform_indices = @transform_0, window_bounds = array<i64: 1, 1, 8, 130>}, {pipeline_mode = #tpu.pipeline_mode<synchronous>, transform_indices = @transform_1, window_bounds = array<i64: 8, 24>}, {pipeline_mode = #tpu.pipeline_mode<synchronous>, transform_indices = @transform_2, window_bounds = array<i64: 8, 1>}, {transform_indices = @transform_3, window_bounds = array<i64: 1, 8, 128>}]} {
    %c0 = arith.constant 0 : index
    %c0_0 = arith.constant 0 : index
    %c0_1 = arith.constant 0 : index
    %c0_2 = arith.constant 0 : index
    %0 = vector.load %arg2[%c0, %c0_0, %c0_1, %c0_2] : memref<1x1x8x130xf32, #tpu.memory_space<vmem>>, vector<1x1x8x130xf32>
    %1 = vector.shape_cast %0 : vector<1x1x8x130xf32> to vector<8x130xf32>
    %2 = vector.extract_strided_slice %1 {offsets = [0, 0], sizes = [8, 128], strides = [1, 1]} : vector<8x130xf32> to vector<8x128xf32>
    %3 = vector.extract_strided_slice %1 {offsets = [0, 1], sizes = [8, 128], strides = [1, 1]} : vector<8x130xf32> to vector<8x128xf32>
    %4 = vector.extract_strided_slice %1 {offsets = [0, 2], sizes = [8, 128], strides = [1, 1]} : vector<8x130xf32> to vector<8x128xf32>
    %5 = tpu.concatenate %2, %3, %4 in 0 : vector<8x128xf32>, vector<8x128xf32>, vector<8x128xf32> -> vector<24x128xf32>
    %c0_3 = arith.constant 0 : index
    %c0_4 = arith.constant 0 : index
    %6 = vector.load %arg3[%c0_3, %c0_4] : memref<8x24xf32, #tpu.memory_space<vmem>>, vector<8x24xf32>
    %cst = arith.constant dense<0.000000e+00> : vector<8x128xf32>
    %7 = tpu.matmul %6, %5, %cst {dimension_numbers = #tpu.dot_dimension_numbers<[1], [0], [0], [1], [0, 0, 1, 1], [], []>} : vector<8x24xf32>, vector<24x128xf32>, vector<8x128xf32> -> vector<8x128xf32>
    %c0_5 = arith.constant 0 : index
    %c0_6 = arith.constant 0 : index
    %8 = vector.load %arg4[%c0_5, %c0_6] : memref<8x1xf32, #tpu.memory_space<vmem>>, vector<8x1xf32>
    %9 = vector.broadcast %8 : vector<8x1xf32> to vector<8x128xf32>
    %10 = arith.addf %7, %9 : vector<8x128xf32>
    %c0_7 = arith.constant 0 : index
    %c0_8 = arith.constant 0 : index
    %c0_9 = arith.constant 0 : index
    %11 = vector.load %arg5[%c0_7, %c0_8, %c0_9] : memref<1x8x128xf32, #tpu.memory_space<vmem>>, vector<1x8x128xf32>
    %12 = vector.shape_cast %11 : vector<1x8x128xf32> to vector<8x128xf32>
    %13 = vector.shape_cast %10 : vector<8x128xf32> to vector<1x8x128xf32>
    tpu.vector_store %arg5[%c0_7, %c0_8, %c0_9], %13 {strides = array<i32>} : memref<1x8x128xf32, #tpu.memory_space<vmem>>, vector<1x8x128xf32>,
    return
  }
  func.func @transform_0(%arg0: i32, %arg1: i32) -> (i32, i32, i32, i32) {
    %c0_i32 = arith.constant 0 : i32
    %c0_i32_0 = arith.constant 0 : i32
    %c0_i32_1 = arith.constant 0 : i32
    return %arg0, %arg1, %c0_i32, %c0_i32_0 : i32, i32, i32, i32
  }
  func.func @transform_1(%arg0: i32, %arg1: i32) -> (i32, i32) {
    %c0_i32 = arith.constant 0 : i32
    %c0_i32_0 = arith.constant 0 : i32
    %c0_i32_1 = arith.constant 0 : i32
    return %c0_i32, %c0_i32_0 : i32, i32
  }
  func.func @transform_2(%arg0: i32, %arg1: i32) -> (i32, i32) {
    %c0_i32 = arith.constant 0 : i32
    %c0_i32_0 = arith.constant 0 : i32
    %c0_i32_1 = arith.constant 0 : i32
    return %c0_i32, %c0_i32_0 : i32, i32
  }
  func.func @transform_3(%arg0: i32, %arg1: i32) -> (i32, i32, i32) {
    %c0_i32 = arith.constant 0 : i32
    %c0_i32_0 = arith.constant 0 : i32
    return %arg0, %c0_i32, %arg1 : i32, i32, i32
  }
}

</mosaic_0001>

<bundles_post_ra>
// kernel: tpu_custom_call.1
= control target key start
LH: loop header
LB: loop body
LE: loop exit
PB: predicated region body
PF: predicated region fallthrough
CT: control target
= control target key end

     0   :  { %8 = vsyncpa [#allocation3], 0  ;;  %s713_s0 = inlined_call_operand.hbm [shape: f32[2,1,8,130], index: 0, kind: input, shape index: {}]   ;;  %s714_s1 = inlined_call_operand.vmem [shape: f32[8,24], index: 1, kind: input, shape index: {}]   ;;  %s715_s2 = inlined_call_operand.vmem [shape: f32[8,1], index: 2, kind: input, shape index: {}]   ;;  %s716_s3 = inlined_call_operand.hbm [shape: f32[2,8,128], index: 3, kind: output, shape index: {}]  }
   0x1   :  { %10 = vsyncpa [#allocation3 + $0x1], 0 }
   0x2   :  { %11 = vsyncpa [#allocation4], 0 }
   0x3   :  { %13 = vsyncpa [#allocation4 + $0x1], 0  ;;  %s586_s12 = smov 0   ;;  %s588_s13 = smov 0  }
   0x4   :  { %s590_s14 = smov 0   ;;  %s592_s15 = smov 0  }
   0x5   :  { %s594_s16 = smov 0   ;;  %s596_s17 = smov 0  }
   0x6 LB: > { %s356_s18 = sadd.s32 4294967295, %s561_s17   ;;  %s357_s19 = sadd.s32 4294967294, %s561_s17   ;;  %s561_s17 = sphi %s596_s17, %s19_s17   ;;  %s557_s16 = sphi %s594_s16, %s725_s16   ;;  %s553_s15 = sphi %s592_s15, %s724_s15   ;;  %s549_s14 = sphi %s590_s14, %s723_s14   ;;  %s545_s13 = sphi %s588_s13, %s722_s13   ;;  %s541_s12 = sphi %s586_s12, %s721_s12  }
   0x7   : > { %s31_s20 = sadd.s32 1, %s557_s16  ;;  %s40_s21 = sadd.s32 1, %s549_s14 }
   0x8   : > { %p33_p0 = scmp.ge.s32.totalorder %s31_s20, 2  ;;  %p47_p1 = scmp.ne.s32.totalorder %s549_s14, %s545_s13 }
   0x9   : > { %p48_p2 = scmp.eq.s32.totalorder %s561_s17, 0  ;;  %p53_p3 = scmp.ne.s32.totalorder %s545_s13, %s541_s12 }
   0xa   : > { %s727_s20 = smov (%p33_p0, %s31_s20), 0  ;;  %p54_p5 = scmp.eq.s32.totalorder %s356_s18, 0 }
   0xb   : > { %p627_p4 = por %p48_p2, %p47_p1  ;;  %s35_s23 = ssub.s32 %s557_s16, %s727_s20 }
   0xc   : > { %p121_p6 = scmp.eq.s32.totalorder %s356_s18, 1  ;;  %p38_p7 = scmp.eq.s32.totalorder %s35_s23, 0 }
   0xd   : > { %p633_p8 = por %p54_p5, %p53_p3  ;;  %p127_p10 = scmp.eq.s32.totalorder %s357_s19, 1 }
   0xe   : > { %p637_p9 = por %p121_p6, %p47_p1  ;;  %p359_p12 = scmp.ge.s32.totalorder %s561_s17, 2 }
   0xf   : > { %s642_s26 = scalar_select %p38_p7, %s549_s14, %s40_s21  }
  0x10   : > { %p644_p11 = por %p127_p10, %p53_p3  ;;  %p384_p13 = scmp.lt.s32.totalorder %s561_s17, 2 }
  0x11   : > { %s153_s28 = sand.u32 1, %s549_s14   ;;  %s371_s30 = sshll.u32 %s557_s16, 4 }
  0x12   : > { %s360_s29 = sshll.u32 %s153_s28, 4  ;;  %s164_s6 = scalar_lea.hbm %s713_s0, %s371_s30 }
  0x13   : > { %s157_s7 = scalar_lea.vmem [#allocation2], %s360_s29  ;;  %s166_s9 = sshll.u32 %s164_s6, 4  ;;  %s167_s9 = int_to_ptr.hbm [resolvable:$true] %s166_s9 }
  0x14   : > { %s168_s8 = sshll.u32 %s157_s7, 4  ;;  %p377_p0 = pnand %p384_p13, %p627_p4  ;;  %s169_s8 = int_to_ptr.vmem [resolvable:$true] %s168_s8 }
  0x15   : > { %p363_p1 = scmp.ge.s32.totalorder %s561_s17, 1  ;;  %p173_p2 = scmp.lt.s32.totalorder %s561_s17, 3 }
  0x16   : > { %s154_s10 = scalar_lea.sflag [#allocation3], %s153_s28 }
  0x17   : > { %379 = dma.hbm_to_vmem [thread:$0]  (!%p377_p0), %s167_s9, 256, %s169_s8, %s154_s10  }
  0x18   : > { %p174_p3 = pnand %p363_p1, %p173_p2 }
  0x19   : > { %s660_s11 = sand.u32 (!%p174_p3), 1, %s545_s13  }
  0x1a   : > { %177 = sbr.rel (%p174_p3) target bundleno = 295 (0x127), region = 32  ;;  %s364_s18 = sshll.u32 (!%p174_p3), %s660_s11, 4 }
  0x1b   : > { %s180_s19 = scalar_lea.sflag (!%p174_p3), [#allocation3], %s660_s11  ;;  %s183_s21 = scalar_lea.vmem (!%p174_p3), [#allocation2], %s364_s18 }
  0x1f   : > { %532 = dma.done.wait (%p633_p8), %s180_s19, 256  }
  0x20   : > { %534 = vsyncadd (%p633_p8), %s180_s19, 4294967040  ;;  %v207_v0 = vld [vmem:[%s183_s21] sm:$0xff]  ;;  %v208_v1 = vld [vmem:[%s183_s21 + $0x8] sm:$0xff]  ;;  %s563_s22 = smov 126   ;;  %s564_s23 = smov 127   ;;  %v565_v4 = vmov 0  }
  0x21   : > { %v437_v2 = vpack.i.bf16 %v208_v1, %v207_v0  ;;  %v226_v3 = vld [vmem:[%s715_s2] sm:$0xff]  ;;  %447 = vset.pattern.permute.xlu1 %v565_v4  ;;  %448 = vset.pattern.permute.xlu0 %v565_v4  ;;  %vm222_vm0 = vcmask 1031168   ;;  %vm215_vm1 = vcmask 1039360   ;;  %vm232_vm2 = vcmask 195584   ;;  %s365_s4 = sshll.u32 %s660_s11, 3  ;;  %s368_s5 = sshll.u32 %s553_s15, 3 }
  0x22   : > { %229 = vperm.xlu1 %447, %v226_v3   ;;  %v225_v13 = vld [vmem:[%s714_s1] sm:$0xff]  ;;  %s269_s8 = scalar_lea.hbm %s716_s3, %s368_s5  ;;  %s206_s9 = scalar_lea.vmem [#allocation5], %s365_s4 }
  0x23   : > { %438 = vrot.lane.b32.xlu0 %v437_v2, %s563_s22  ;;  %s271_s10 = sshll.u32 %s206_s9, 4  ;;  %s273_s18 = sshll.u32 %s269_s8, 4  ;;  %s272_s10 = int_to_ptr.vmem [resolvable:$true] %s271_s10  ;;  %s274_s18 = int_to_ptr.hbm [resolvable:$true] %s273_s18 }
  0x24   : > { %s258_s19 = scalar_lea.sflag [#allocation4], %s660_s11  ;;  %s493_s21 = sshra.s32 %s274_s18, 4  ;;  %s494_s21 = int_to_ptr.hbm [resolvable:$true] %s493_s21 }
  0x25   : > { %s495_s22 = scalar_lea.hbm %s494_s21, 8  ;;  %s499_s28 = scalar_lea.hbm %s716_s3, 16 }
  0x26   : > { %p496_p4 = scmp.ne.s32.totalorder %s494_s21, %s495_s22  ;;  %p500_p7 = scmp.lt.s32.totalorder %s494_s21, %s716_s3 }
  0x27   : > { %p501_p8 = scmp.lt.s32.totalorder %s499_s28, %s495_s22 }
  0x28   : > { %p497_p5 = pnand %p496_p4, %p637_p9 }
  0x29   : > { %p502_p10 = por %p501_p8, %p500_p7 }
  0x2a   : > { %p498_p6 = pneg %p497_p5 }
  0x2b   : > { %443 = vrot.lane.b32.xlu0 %v437_v2, %s564_s23 }
  0x2c   : > { %p503_p13 = pnand %p502_p10, %p498_p6 }
  0x94   : > { %v230_v14 = vpop.permute.xlu1 %229 }
  0x95   : > { %v439_v5 = vpop.permute.xlu0 %438 }
  0x96   : > { %v441_v6 = vunpack.i.h.bf16 %v439_v5  ;;  %v440_v7 = vunpack.i.l.bf16 %v439_v5 }
  0x98   : > { %v223_v8 = vsel %vm222_vm0, %v440_v7, %v441_v6 }
  0x99   : > { %249 = vmatpush.msra.mxu0 %v223_v8 }
  0x9d   : > { %v444_v9 = vpop.permute.xlu0 %443 }
  0x9e   : > { %v446_v10 = vunpack.i.h.bf16 %v444_v9  ;;  %v445_v11 = vunpack.i.l.bf16 %v444_v9 }
  0xa0   : > { %v216_v12 = vsel %vm215_vm1, %v445_v11, %v446_v10 }
  0xa1   : > { %250 = vmatpush.msra.mxu0 %v216_v12 }
  0xa3   : > { %251 = vmatpush.msra.mxu0 %v207_v0 }
  0xa4   : > { %366 = vmatmul.msk.f32.vlgmr.msra.gmra.mxu0 %vm232_vm2, %v225_v13 }
 0x121   : > { %v253_v15 = vpop.f32.mrf.mxu0 }
 0x122   : > { %v254_v16 = vadd.f32 %v253_v15, %v230_v14 }
 0x124   : > { %256 = vst [vmem:[%s206_s9] sm:$0xff] %v254_v16 }
 0x125   : > { %506 = shalt.err (!%p503_p13)
}
 0x126   : > { %374 = dma.vmem_to_hbm [thread:$0]  (%p637_p9), %s272_s10, 128, %s274_s18, %s258_s19  }
 0x127 PF: > { %s285_s11 = sand.u32 1, %s541_s12   ;;  %p381_p0 = pnand %p359_p12, %p644_p11 }
 0x128   : > { %s286_s30 = scalar_lea.sflag [#allocation4], %s285_s11 }
 0x129   : > { %p382_p1 = pneg %p381_p0 }
 0x12b   : > { %536 = dma.done.wait (%p382_p1), %s286_s30, 128  }
 0x12c   : > { %538 = vsyncadd (%p382_p1), %s286_s30, 4294967168  ;;  %s19_s17 = sadd.s32 1, %s561_s17   ;;  %s721_s12 = smov %s545_s13 }
 0x12d   : > { %p16_p2 = scmp.ge.s32.totalorder %s19_s17, 4   ;;  %s722_s13 = smov %s549_s14 }
 0x12e   : > { %s723_s14 = smov %s642_s26  ;;  %s724_s15 = smov %s557_s16 }
 0x12f   : > { %s725_s16 = smov %s727_s20  ;;  %18 = sbr.rel (!%p16_p2) target bundleno = 6 (0x6), region = 77 }
 0x134   :  { %292 = vsyncpa [#allocation3], 1 }
 0x135   :  { %294 = vsyncpa [#allocation3 + $0x1], 1 }
 0x136   :  { %295 = vsyncpa [#allocation4], 1 }
 0x137   :  { %297 = vsyncpa [#allocation4 + $0x1], 1 }

</bundles_post_ra>
